<compile_context>
chip_gen: v7x
topology: tpu7x:2x2x1
jax: 0.10.0
libtpu: 0.0.40
codegen_flags: <defaults>
</compile_context>

<pallas_src>
import jax
import jax.numpy as jnp
from jax.experimental import pallas as pl
from jax.experimental.pallas import tpu as pltpu


# ----------------------------- Pallas kernel ------------------------------- #

def _feat_concat_kernel(a_ref, b_ref, o_ref):
    """o = concat(a, b) along the last (lane) axis for one row-tile."""
    fa = a_ref.shape[-1]
    o_ref[:, :fa] = a_ref[...]
    o_ref[:, fa:] = b_ref[...]


def _row_tile(n_rows, feat_out, itemsize):
    """Largest row tile whose double-buffered in+out tiles fit ~8 MiB VMEM."""
    budget = 8 * 1024 * 1024
    # Per row: inputs (Fa + Fb) + output (Fa + Fb), each double-buffered.
    per_row = 4 * feat_out * itemsize
    rows = max(8, min(1024, budget // max(per_row, 1)))
    rows = (rows // 8) * 8                     # keep sublane-divisible
    if n_rows <= rows:
        return n_rows                          # full extent -> always legal
    return rows                                # multiple of 8 -> legal block


# ------------------------------ Wrapper ------------------------------------ #

def feature_concat(cnn_feats, c3d_feats):
    """v_feats = concat(cnn_feats, c3d_feats, axis=2) via a gridded Pallas copy.

    cnn_feats: [B, S, Fa]; c3d_feats: [B, S, Fb]  ->  [B, S, Fa + Fb]
    """
    B, S, Fa = cnn_feats.shape
    Fb = c3d_feats.shape[-1]
    Fo = Fa + Fb
    BS = B * S
    itemsize = jnp.dtype(cnn_feats.dtype).itemsize

    # Collapse batch*seq onto the sublane axis (contiguous reshape -> free).
    a2 = cnn_feats.reshape(BS, Fa)
    b2 = c3d_feats.reshape(BS, Fb)

    tile = _row_tile(BS, Fo, itemsize)
    grid = (pl.cdiv(BS, tile),)

    bytes_accessed = 2 * BS * Fo * itemsize    # read Fa+Fb, write Fa+Fb per row

    v_feats_flat = pl.pallas_call(
        _feat_concat_kernel,
        out_shape=jax.ShapeDtypeStruct((BS, Fo), cnn_feats.dtype),
        grid=grid,
        in_specs=[
            pl.BlockSpec((tile, Fa), lambda i: (i, 0)),
            pl.BlockSpec((tile, Fb), lambda i: (i, 0)),
        ],
        out_specs=pl.BlockSpec((tile, Fo), lambda i: (i, 0)),
        compiler_params=pltpu.CompilerParams(
            dimension_semantics=("parallel",)),
        cost_estimate=pl.CostEstimate(
            flops=0, transcendentals=0, bytes_accessed=int(bytes_accessed)),
    )(a2, b2)

    return v_feats_flat.reshape(B, S, Fo)


# ------------------------------ Encoder ------------------------------------ #

class Encoder:
    """JAX/Pallas port of the PyTorch Encoder (no learned parameters)."""

    def __init__(self, cnn_feature_size, c3d_feature_size, i3d_feature_size,
                 n_tags, hidden_size, global_tagger_hidden_size,
                 specific_tagger_hidden_size):
        self.cnn_feature_size = cnn_feature_size
        self.c3d_feature_size = c3d_feature_size
        self.i3d_feature_size = i3d_feature_size
        self.n_tags = n_tags
        self.hidden_size = hidden_size
        self.global_tagger_hidden_size = global_tagger_hidden_size
        self.specific_tagger_hidden_size = specific_tagger_hidden_size

    def __call__(self, cnn_feats, c3d_feats, cnn_globals, tags_globals,
                 res_eco_globals):
        batch_size = cnn_feats.shape[0]

        # Large feature-dim concat: single gridded Pallas launch.
        v_feats = feature_concat(cnn_feats, c3d_feats)

        # Tiny globals concat: plain XLA (fuses into the consumer; a Pallas
        # launch for ~640 B would be pure fixed overhead).
        v_globals = jnp.concatenate((res_eco_globals, cnn_globals), axis=1)

        # h, c = zeros(2 * 2, B, hidden): torch.zeros defaults to float32, so
        # the state dtype is f32 regardless of the feature dtype.  A broadcast
        # of a constant is free in XLA — no kernel needed.
        h = jnp.zeros((2 * 2, batch_size, self.hidden_size), jnp.float32)
        c = jnp.zeros((2 * 2, batch_size, self.hidden_size), jnp.float32)

        s_globals = tags_globals  # passthrough
        return v_feats, (h, c), s_globals, v_globals


# ------------------------------- Main --------------------------------------- #

if __name__ == "__main__":
    # Small, deterministic shapes consistent with the module.
    B, S = 2, 8
    cnn_feature_size = 32
    c3d_feature_size = 24
    i3d_feature_size = 16
    n_tags = 20
    hidden_size = 16
    cnn_global_size = 32
    res_eco_global_size = 48

    key = jax.random.PRNGKey(0)
    k1, k2, k3, k4, k5 = jax.random.split(key, 5)
    cnn_feats = jax.random.normal(k1, (B, S, cnn_feature_size), jnp.float32)
    c3d_feats = jax.random.normal(k2, (B, S, c3d_feature_size), jnp.float32)
    cnn_globals = jax.random.normal(k3, (B, cnn_global_size), jnp.float32)
    tags_globals = jax.random.normal(k4, (B, n_tags), jnp.float32)
    res_eco_globals = jax.random.normal(k5, (B, res_eco_global_size), jnp.float32)

    enc = Encoder(cnn_feature_size, c3d_feature_size, i3d_feature_size,
                  n_tags, hidden_size,
                  global_tagger_hidden_size=64,
                  specific_tagger_hidden_size=64)

    v_feats, (h, c), s_globals, v_globals = enc(
        cnn_feats, c3d_feats, cnn_globals, tags_globals, res_eco_globals)
    jax.block_until_ready((v_feats, h, c, s_globals, v_globals))

    # Reference check against plain-JAX semantics (mirrors the PyTorch forward).
    ref_v_feats = jnp.concatenate((cnn_feats, c3d_feats), axis=2)
    ref_v_globals = jnp.concatenate((res_eco_globals, cnn_globals), axis=1)
    assert v_feats.shape == (B, S, cnn_feature_size + c3d_feature_size)
    assert h.shape == (4, B, hidden_size) and c.shape == (4, B, hidden_size)
    assert h.dtype == jnp.float32 and c.dtype == jnp.float32
    assert jnp.allclose(v_feats, ref_v_feats)
    assert jnp.allclose(v_globals, ref_v_globals)
    assert jnp.all(h == 0.0) and jnp.all(c == 0.0)
    assert jnp.allclose(s_globals, tags_globals)

    print("KERNEL_OK")
</pallas_src>

<mosaic_0001>
module attributes {stable_mosaic.version = 11 : i64} {
  func.func @_feat_concat_kernel(%arg0: i32, %arg1: memref<16x32xf32, #tpu.memory_space<vmem>>, %arg2: memref<16x24xf32, #tpu.memory_space<vmem>>, %arg3: memref<16x56xf32, #tpu.memory_space<vmem>>) attributes {dimension_semantics = [#tpu.dimension_semantics<parallel>], iteration_bounds = array<i64: 1>, scalar_prefetch = 0 : i64, scratch_operands = 0 : i64, tpu.core_type = #tpu.core_type<tc>, window_params = [{transform_indices = @transform_0, window_bounds = array<i64: 16, 32>}, {transform_indices = @transform_1, window_bounds = array<i64: 16, 24>}, {transform_indices = @transform_2, window_bounds = array<i64: 16, 56>}]} {
    %c0 = arith.constant 0 : index
    %c0_0 = arith.constant 0 : index
    %0 = vector.load %arg1[%c0, %c0_0] : memref<16x32xf32, #tpu.memory_space<vmem>>, vector<16x32xf32>
    %c0_1 = arith.constant 0 : index
    %c0_2 = arith.constant 0 : index
    %1 = vector.load %arg3[%c0_1, %c0_2] : memref<16x56xf32, #tpu.memory_space<vmem>>, vector<16x32xf32>
    tpu.vector_store %arg3[%c0_1, %c0_2], %0 {strides = array<i32>} : memref<16x56xf32, #tpu.memory_space<vmem>>, vector<16x32xf32>,
    %c0_3 = arith.constant 0 : index
    %c0_4 = arith.constant 0 : index
    %2 = vector.load %arg2[%c0_3, %c0_4] : memref<16x24xf32, #tpu.memory_space<vmem>>, vector<16x24xf32>
    %c0_5 = arith.constant 0 : index
    %c32 = arith.constant 32 : index
    %3 = vector.load %arg3[%c0_5, %c32] : memref<16x56xf32, #tpu.memory_space<vmem>>, vector<16x24xf32>
    tpu.vector_store %arg3[%c0_5, %c32], %2 {strides = array<i32>} : memref<16x56xf32, #tpu.memory_space<vmem>>, vector<16x24xf32>,
    return
  }
  func.func @transform_0(%arg0: i32) -> (i32, i32) {
    %c0_i32 = arith.constant 0 : i32
    %c0_i32_0 = arith.constant 0 : i32
    return %arg0, %c0_i32 : i32, i32
  }
  func.func @transform_1(%arg0: i32) -> (i32, i32) {
    %c0_i32 = arith.constant 0 : i32
    %c0_i32_0 = arith.constant 0 : i32
    return %arg0, %c0_i32 : i32, i32
  }
  func.func @transform_2(%arg0: i32) -> (i32, i32) {
    %c0_i32 = arith.constant 0 : i32
    %c0_i32_0 = arith.constant 0 : i32
    return %arg0, %c0_i32 : i32, i32
  }
}

</mosaic_0001>

<bundles_post_ra>
// kernel: tpu_custom_call.1
= control target key start
LH: loop header
LB: loop body
LE: loop exit
PB: predicated region body
PF: predicated region fallthrough
CT: control target
= control target key end

     0   :  { %7 = vsyncpa [#allocation3], 0  ;;  %s220_s0 = inlined_call_operand.hbm [shape: f32[16,32], index: 0, kind: input, shape index: {}]   ;;  %s221_s1 = inlined_call_operand.hbm [shape: f32[16,24], index: 1, kind: input, shape index: {}]   ;;  %s222_s2 = inlined_call_operand.hbm [shape: f32[16,56], index: 2, kind: output, shape index: {}]  }
   0x1   :  { %8 = vsyncpa [#allocation6], 0 }
   0x2   :  { %9 = vsyncpa [#allocation4], 0  ;;  %s154_s9 = smov [#allocation2]   ;;  %s82_s13 = scalar_lea.hbm %s220_s0, 256 }
   0x3   :  { %s15_s10 = sshll.u32 %s154_s9, 4  ;;  %p83_p0 = scmp.ne.s32.totalorder %s220_s0, %s82_s13  ;;  %s16_s10 = int_to_ptr.vmem [resolvable:$true] %s15_s10 }
   0x4   :  { %p86_p1 = scmp.lt.u32.totalorder %s82_s13, %s220_s0 }
   0x6   :  { %p88_p2 = pnand %p86_p1, %p83_p0 }
   0x8   :  { %91 = shalt.err (!%p88_p2)
}
   0x9   :  { %s92_s18 = scalar_lea.vmem %s16_s10, 256  ;;  %p97_p4 = scmp.lt.s32.totalorder %s16_s10, %s16_s10 }
   0xa   :  { %p93_p3 = scmp.ne.s32.totalorder %s16_s10, %s92_s18  ;;  %p98_p5 = scmp.lt.s32.totalorder %s92_s18, %s92_s18 }
   0xc   :  { %p99_p6 = por %p98_p5, %p97_p4 }
   0xe   :  { %p100_p7 = pnand %p99_p6, %p93_p3 }
  0x10   :  { %103 = shalt.err (!%p100_p7)
}
  0x11   :  { %s155_s19 = smov 128   ;;  %s156_s20 = smov 8  }
  0x12   :  { %21 = dma.hbm_to_vmem [thread:$0]  %s220_s0, 256, %s16_s10, [#allocation3], %s155_s19, %s155_s19, %s156_s20  }
  0x13   :  { %s157_s23 = smov [#allocation5]   ;;  %s104_s27 = scalar_lea.hbm %s221_s1, 256 }
  0x14   :  { %s27_s24 = sshll.u32 %s157_s23, 4  ;;  %p105_p8 = scmp.ne.s32.totalorder %s221_s1, %s104_s27  ;;  %s28_s24 = int_to_ptr.vmem [resolvable:$true] %s27_s24 }
  0x15   :  { %p108_p9 = scmp.lt.u32.totalorder %s104_s27, %s221_s1 }
  0x17   :  { %p110_p10 = pnand %p108_p9, %p105_p8 }
  0x19   :  { %113 = shalt.err (!%p110_p10)
}
  0x1a   :  { %s114_s4 = scalar_lea.vmem %s28_s24, 256  ;;  %p119_p12 = scmp.lt.s32.totalorder %s28_s24, %s28_s24 }
  0x1b   :  { %p115_p11 = scmp.ne.s32.totalorder %s28_s24, %s114_s4  ;;  %p120_p13 = scmp.lt.s32.totalorder %s114_s4, %s114_s4 }
  0x1d   :  { %p121_p0 = por %p120_p13, %p119_p12 }
  0x1f   :  { %p122_p1 = pnand %p121_p0, %p115_p11 }
  0x21   :  { %125 = shalt.err (!%p122_p1)
}
  0x22   :  { %33 = dma.hbm_to_vmem [thread:$0]  %s221_s1, 256, %s28_s24, [#allocation6], %s155_s19, %s155_s19, %s156_s20  }
  0x23   :  { %148 = dma.done.wait [#allocation3], 256  }
  0x24   :  { %149 = vsyncadd [#allocation3], 4294967040 }
  0x25   :  { %150 = dma.done.wait [#allocation6], 256  }
  0x26   :  { %151 = vsyncadd [#allocation6], 4294967040  ;;  %vm42_vm0 = vcmask 261120   ;;  %v45_v0 = vld [vmem:[#allocation5] sm:$0xff]  ;;  %v40_v1 = vld [vmem:[#allocation2] sm:$0xff]  ;;  %s158_s6 = smov 32  }
  0x27   :  { %49 = vrot.lane.b32.xlu0 %v45_v0, %s158_s6  ;;  %v41_v2 = vld [vmem:[#allocation2 + $0x8] sm:$0xff]  ;;  %43 = vst.msk [vmem:[#allocation7] sm:$0xff] %vm42_vm0, %v40_v1  ;;  %v46_v3 = vld [vmem:[#allocation5 + $0x8] sm:$0xff]  ;;  %vm55_vm1 = vcmask 457984   ;;  %s159_s7 = smov [#allocation7]  }
  0x28   :  { %44 = vst.msk [vmem:[#allocation7 + $0x8] sm:$0xff] %vm42_vm0, %v41_v2  ;;  %s63_s8 = sshll.u32 %s159_s7, 4  ;;  %s64_s8 = int_to_ptr.vmem [resolvable:$true] %s63_s8 }
  0x29   :  { %s126_s1 = scalar_lea.vmem %s64_s8, 256  ;;  %p131_p3 = scmp.lt.s32.totalorder %s64_s8, %s64_s8 }
  0x2a   :  { %p127_p2 = scmp.ne.s32.totalorder %s64_s8, %s126_s1  ;;  %p132_p4 = scmp.lt.s32.totalorder %s126_s1, %s126_s1 }
  0x2b   :  { %51 = vrot.lane.b32.xlu0 %v46_v3, %s158_s6 }
  0x2c   :  { %p133_p5 = por %p132_p4, %p131_p3 }
  0x2e   :  { %p134_p6 = pnand %p133_p5, %p127_p2 }
  0x99   :  { %v50_v4 = vpop.permute.xlu0 %49 }
  0x9a   :  { %56 = vst.msk [vmem:[#allocation7] sm:$0xff] %vm55_vm1, %v50_v4 }
  0x9d   :  { %v52_v5 = vpop.permute.xlu0 %51 }
  0x9e   :  { %57 = vst.msk [vmem:[#allocation7 + $0x8] sm:$0xff] %vm55_vm1, %v52_v5 }
  0x9f   :  { %137 = shalt.err (!%p134_p6)
}
  0xa0   :  { %s138_s11 = scalar_lea.hbm %s222_s2, 256 }
  0xa1   :  { %p139_p7 = scmp.ne.s32.totalorder %s222_s2, %s138_s11  ;;  %p142_p8 = scmp.lt.u32.totalorder %s138_s11, %s222_s2 }
  0xa3   :  { %p144_p9 = pnand %p142_p8, %p139_p7 }
  0xa5   :  { %147 = shalt.err (!%p144_p9)
}
  0xa6   :  { %69 = dma.vmem_to_hbm [thread:$0]  %s64_s8, 256, %s222_s2, [#allocation4], %s155_s19, %s155_s19, %s156_s20  }
  0xa7   :  { %152 = dma.done.wait [#allocation4], 256  }
  0xa8   :  { %153 = vsyncadd [#allocation4], 4294967040 }
  0xa9   :  { %73 = vsyncpa [#allocation3], 1 }
  0xaa   :  { %74 = vsyncpa [#allocation6], 1 }
  0xab   :  { %75 = vsyncpa [#allocation4], 1 }

</bundles_post_ra>
